<compile_context>
chip_gen: v6e
topology: v6e:2x2x1
jax: 0.10.0
libtpu: 0.0.40
codegen_flags: <defaults>
</compile_context>

<pallas_src>
import jax
import jax.numpy as jnp
from jax.experimental import pallas as pl
from jax.experimental.pallas import tpu as pltpu


def _stats_kernel(a_ref, w_ref, sum_ref, ssq_ref):
    """Row tile: im2col (TM,K) @ weight (K,Cp) -> per-tile channel sum / sumsq."""
    acc = jnp.dot(a_ref[...], w_ref[...], preferred_element_type=jnp.float32)
    sum_ref[0] = jnp.sum(acc, axis=0, keepdims=True)
    ssq_ref[0] = jnp.sum(acc * acc, axis=0, keepdims=True)


def _conv_stats_kernel(a_ref, w_ref, y_ref, sum_ref, ssq_ref):
    """Row tile: bf16 conv tile + f32 per-tile stats (Option B, large Cin)."""
    acc = jnp.dot(a_ref[...], w_ref[...], preferred_element_type=jnp.float32)
    y_ref[...] = acc.astype(y_ref.dtype)
    sum_ref[0] = jnp.sum(acc, axis=0, keepdims=True)
    ssq_ref[0] = jnp.sum(acc * acc, axis=0, keepdims=True)


def _conv_apply_kernel(a_ref, w_ref, scale_ref, shift_ref, o_ref):
    """Row tile: recompute the conv matmul and apply the folded BN affine."""
    acc = jnp.dot(a_ref[...], w_ref[...], preferred_element_type=jnp.float32)
    o_ref[...] = acc * scale_ref[...] + shift_ref[...]


def atrous_module_forward(x_nchw, w_oihw, bias, gamma, beta, rate,
                          eps=1e-5, tile_rows=1024):
    # The conv bias is mathematically cancelled by BN's mean subtraction.
    del bias
    N, Cin, H, W = x_nchw.shape
    Cout = w_oihw.shape[0]
    K = 9 * Cin
    rows = N * H * W
    Cp = pl.cdiv(Cout, 128) * 128                     # lane-dense output channels

    # ---- row-tile sizing against a v7x-safe VMEM budget ----
    w_bytes = K * Cp * 2
    big_weight = w_bytes > (4 << 20)
    w_bufs = 1 if big_weight else 2                   # Buffered(1) only when large
    budget = 40 << 20                                 # conservative (v7x: 64 MiB phys)

    def _need(t):
        return (2 * t * K * 2          # double-buffered bf16 im2col tile
                + w_bufs * w_bytes     # constant weight
                + 2 * t * Cp * 4       # double-buffered f32 output tile (worst case)
                + 8 * Cp * 4)          # stats blocks

    tm = max(8, min(tile_rows, pl.cdiv(rows, 8) * 8))
    tm = max(8, (tm // 8) * 8)
    while tm > 8 and _need(tm) > budget:
        tm = max(8, (tm // 2 // 8) * 8)
    TM = tm
    rows_p = pl.cdiv(rows, TM) * TM
    G = rows_p // TM

    vmem_cap = int(min(56 << 20, max(32 << 20, 2 * _need(TM))))
    cparams = pltpu.CompilerParams(dimension_semantics=("parallel",),
                                   vmem_limit_bytes=vmem_cap)

    def _wspec():
        # Constant block; single-buffer it when big so v7x VMEM is not blown.
        if big_weight:
            try:
                return pl.BlockSpec((K, Cp), lambda i: (0, 0),
                                    pipeline_mode=pl.Buffered(1))
            except TypeError:
                pass
        return pl.BlockSpec((K, Cp), lambda i: (0, 0))

    # ---- glue (XLA), all in bf16: NCHW->NHWC, spatial pad, im2col, weight ----
    x_nhwc = jnp.transpose(x_nchw, (0, 2, 3, 1)).astype(jnp.bfloat16)
    xp = jnp.pad(x_nhwc, ((0, 0), (rate, rate), (rate, rate), (0, 0)))
    taps = [xp[:, kh * rate:kh * rate + H, kw * rate:kw * rate + W, :]
            for kh in range(3) for kw in range(3)]
    im2col = jnp.concatenate(taps, axis=-1).reshape(rows, K)
    if rows_p != rows:
        # Zero pad rows contribute exactly nothing to sum / sum-of-squares.
        im2col = jnp.pad(im2col, ((0, rows_p - rows), (0, 0)))

    # (Cout, Cin, 3, 3) -> (kh, kw, cin, cout) -> (9*Cin, Cout) -> pad to Cp lanes
    w_k = jnp.transpose(w_oihw, (2, 3, 1, 0)).reshape(K, Cout)
    w_k = jnp.pad(w_k, ((0, 0), (0, Cp - Cout))).astype(jnp.bfloat16)

    # Option A (recompute matmul in pass 2) beats storing a conv intermediate
    # when the bf16 im2col row is cheaper than a bf16 write+read of the Cp row.
    use_recompute = (2 * K) < (4 * Cp)

    conv_bf16 = None
    if use_recompute:
        # ---- pass 1 (Option A): stats only, no conv intermediate in HBM ----
        sums, ssqs = pl.pallas_call(
            _stats_kernel,
            out_shape=(jax.ShapeDtypeStruct((G, 1, Cp), jnp.float32),
                       jax.ShapeDtypeStruct((G, 1, Cp), jnp.float32)),
            grid=(G,),
            in_specs=[pl.BlockSpec((TM, K), lambda i: (i, 0)), _wspec()],
            out_specs=(pl.BlockSpec((1, 1, Cp), lambda i: (i, 0, 0)),
                       pl.BlockSpec((1, 1, Cp), lambda i: (i, 0, 0))),
            compiler_params=cparams,
            cost_estimate=pl.CostEstimate(
                flops=2 * rows_p * K * Cp, transcendentals=0,
                bytes_accessed=rows_p * K * 2 + w_bytes + 2 * G * Cp * 4),
        )(im2col, w_k)
    else:
        # ---- pass 1 (Option B): bf16 conv tile + stats ----
        conv_bf16, sums, ssqs = pl.pallas_call(
            _conv_stats_kernel,
            out_shape=(jax.ShapeDtypeStruct((rows_p, Cp), jnp.bfloat16),
                       jax.ShapeDtypeStruct((G, 1, Cp), jnp.float32),
                       jax.ShapeDtypeStruct((G, 1, Cp), jnp.float32)),
            grid=(G,),
            in_specs=[pl.BlockSpec((TM, K), lambda i: (i, 0)), _wspec()],
            out_specs=(pl.BlockSpec((TM, Cp), lambda i: (i, 0)),
                       pl.BlockSpec((1, 1, Cp), lambda i: (i, 0, 0)),
                       pl.BlockSpec((1, 1, Cp), lambda i: (i, 0, 0))),
            compiler_params=cparams,
            cost_estimate=pl.CostEstimate(
                flops=2 * rows_p * K * Cp, transcendentals=0,
                bytes_accessed=(rows_p * K * 2 + w_bytes
                                + rows_p * Cp * 2 + 2 * G * Cp * 4)),
        )(im2col, w_k)

    # ---- fold BN (training mode, biased variance) into per-channel scale/shift ----
    n = jnp.float32(rows)                       # true element count (pad rows are 0)
    ch_sum = jnp.sum(sums[:, 0, :], axis=0)     # (Cp,)
    ch_ssq = jnp.sum(ssqs[:, 0, :], axis=0)     # (Cp,)
    mean = ch_sum / n
    var = jnp.maximum(ch_ssq / n - mean * mean, 0.0)
    inv = jax.lax.rsqrt(var + eps)
    gamma_p = jnp.pad(gamma.astype(jnp.float32), (0, Cp - Cout), constant_values=1.0)
    beta_p = jnp.pad(beta.astype(jnp.float32), (0, Cp - Cout))
    scale = (gamma_p * inv).reshape(1, Cp)
    shift = (beta_p - mean * gamma_p * inv).reshape(1, Cp)

    if use_recompute:
        # ---- pass 2 (Option A): recompute conv, apply folded affine, write final ----
        out_flat = pl.pallas_call(
            _conv_apply_kernel,
            out_shape=jax.ShapeDtypeStruct((rows_p, Cp), jnp.float32),
            grid=(G,),
            in_specs=[pl.BlockSpec((TM, K), lambda i: (i, 0)), _wspec(),
                      pl.BlockSpec((1, Cp), lambda i: (0, 0)),
                      pl.BlockSpec((1, Cp), lambda i: (0, 0))],
            out_specs=pl.BlockSpec((TM, Cp), lambda i: (i, 0)),
            compiler_params=cparams,
            cost_estimate=pl.CostEstimate(
                flops=2 * rows_p * K * Cp + 2 * rows_p * Cp, transcendentals=0,
                bytes_accessed=(rows_p * K * 2 + w_bytes
                                + rows_p * Cp * 4 + 2 * Cp * 4)),
        )(im2col, w_k, scale, shift)
        out2d = out_flat[:rows, :Cout]
    else:
        # Option B: let XLA fuse the affine into the slice + transpose epilogue.
        out2d = (conv_bf16[:rows, :Cout].astype(jnp.float32)
                 * scale[:, :Cout] + shift[:, :Cout])

    out = out2d.reshape(N, H, W, Cout)
    # Output kept f32 NCHW to match the PyTorch module (bf16 / NHWC would halve
    # the final write if a downstream consumer allowed it).
    return jnp.transpose(out, (0, 3, 1, 2))


def reference_forward(x, w, b, gamma, beta, rate, eps=1e-5):
    """Pure-JAX reference (lax conv + training-mode batchnorm), NCHW."""
    y = jax.lax.conv_general_dilated(
        x, w, window_strides=(1, 1),
        padding=((rate, rate), (rate, rate)),
        rhs_dilation=(rate, rate),
        dimension_numbers=('NCHW', 'OIHW', 'NCHW'))
    y = y + b.reshape(1, -1, 1, 1)
    mean = jnp.mean(y, axis=(0, 2, 3), keepdims=True)
    var = jnp.mean((y - mean) ** 2, axis=(0, 2, 3), keepdims=True)
    return (gamma.reshape(1, -1, 1, 1) * (y - mean) / jnp.sqrt(var + eps)
            + beta.reshape(1, -1, 1, 1))


if __name__ == "__main__":
    # Small shapes consistent with Atrous_module(inplanes=4, planes=8, rate=2)
    N, Cin, H, W = 2, 4, 16, 16
    Cout, rate = 8, 2

    key = jax.random.PRNGKey(0)
    kx, kw, kb, kg, kbe = jax.random.split(key, 5)
    x = jax.random.normal(kx, (N, Cin, H, W), dtype=jnp.float32)
    w = jax.random.normal(kw, (Cout, Cin, 3, 3), dtype=jnp.float32) * 0.1
    b = jax.random.normal(kb, (Cout,), dtype=jnp.float32) * 0.1
    gamma = 1.0 + 0.1 * jax.random.normal(kg, (Cout,), dtype=jnp.float32)
    beta = 0.1 * jax.random.normal(kbe, (Cout,), dtype=jnp.float32)

    fwd = jax.jit(atrous_module_forward, static_argnums=(5,))
    out = jax.block_until_ready(fwd(x, w, b, gamma, beta, rate))
    assert out.shape == (N, Cout, H, W)

    # Tight check against a reference that uses the same bf16-quantized MXU
    # operands (apples-to-apples with the kernel's bf16 matmul, f32 accumulate).
    xq = x.astype(jnp.bfloat16).astype(jnp.float32)
    wq = w.astype(jnp.bfloat16).astype(jnp.float32)
    ref_q = jax.block_until_ready(reference_forward(xq, wq, b, gamma, beta, rate))
    err_q = float(jnp.max(jnp.abs(out - ref_q)))
    assert jnp.allclose(out, ref_q, atol=1e-3, rtol=1e-3), f"max abs err {err_q}"

    # Looser semantic sanity check against the full-f32 reference.
    ref = jax.block_until_ready(reference_forward(x, w, b, gamma, beta, rate))
    err = float(jnp.max(jnp.abs(out - ref)))
    assert jnp.allclose(out, ref, atol=5e-2, rtol=5e-2), f"max abs err {err}"

    print("KERNEL_OK")
</pallas_src>

<mosaic_0001>
module attributes {stable_mosaic.version = 11 : i64} {
  func.func @_stats_kernel(%arg0: i32, %arg1: memref<512x36xbf16, #tpu.memory_space<vmem>>, %arg2: memref<36x128xbf16, #tpu.memory_space<vmem>>, %arg3: memref<1x1x128xf32, #tpu.memory_space<vmem>>, %arg4: memref<1x1x128xf32, #tpu.memory_space<vmem>>) attributes {dimension_semantics = [#tpu.dimension_semantics<parallel>], iteration_bounds = array<i64: 1>, scalar_prefetch = 0 : i64, scratch_operands = 0 : i64, tpu.core_type = #tpu.core_type<tc>, window_params = [{transform_indices = @transform_0, window_bounds = array<i64: 512, 36>}, {pipeline_mode = #tpu.pipeline_mode<synchronous>, transform_indices = @transform_1, window_bounds = array<i64: 36, 128>}, {transform_indices = @transform_2, window_bounds = array<i64: 1, 1, 128>}, {transform_indices = @transform_3, window_bounds = array<i64: 1, 1, 128>}]} {
    %c0 = arith.constant 0 : index
    %c0_0 = arith.constant 0 : index
    %0 = vector.load %arg1[%c0, %c0_0] : memref<512x36xbf16, #tpu.memory_space<vmem>>, vector<512x36xbf16>
    %c0_1 = arith.constant 0 : index
    %c0_2 = arith.constant 0 : index
    %1 = vector.load %arg2[%c0_1, %c0_2] : memref<36x128xbf16, #tpu.memory_space<vmem>>, vector<36x128xbf16>
    %cst = arith.constant dense<0.000000e+00> : vector<512x128xf32>
    %2 = tpu.matmul %0, %1, %cst {dimension_numbers = #tpu.dot_dimension_numbers<[1], [0], [0], [1], [0, 0, 1, 1], [], []>} : vector<512x36xbf16>, vector<36x128xbf16>, vector<512x128xf32> -> vector<512x128xf32>
    %cst_3 = arith.constant dense<0.000000e+00> : vector<128xf32>
    %3 = vector.multi_reduction <add>, %2, %cst_3 [0] : vector<512x128xf32> to vector<128xf32>
    %4 = vector.shape_cast %3 : vector<128xf32> to vector<1x128xf32>
    %c0_4 = arith.constant 0 : index
    %c0_5 = arith.constant 0 : index
    %c0_6 = arith.constant 0 : index
    %5 = vector.load %arg3[%c0_4, %c0_5, %c0_6] : memref<1x1x128xf32, #tpu.memory_space<vmem>>, vector<1x1x128xf32>
    %6 = vector.shape_cast %5 : vector<1x1x128xf32> to vector<1x128xf32>
    %7 = vector.shape_cast %4 : vector<1x128xf32> to vector<1x1x128xf32>
    tpu.vector_store %arg3[%c0_4, %c0_5, %c0_6], %7 {strides = array<i32>} : memref<1x1x128xf32, #tpu.memory_space<vmem>>, vector<1x1x128xf32>,
    %8 = arith.mulf %2, %2 : vector<512x128xf32>
    %cst_7 = arith.constant dense<0.000000e+00> : vector<128xf32>
    %9 = vector.multi_reduction <add>, %8, %cst_7 [0] : vector<512x128xf32> to vector<128xf32>
    %10 = vector.shape_cast %9 : vector<128xf32> to vector<1x128xf32>
    %c0_8 = arith.constant 0 : index
    %c0_9 = arith.constant 0 : index
    %c0_10 = arith.constant 0 : index
    %11 = vector.load %arg4[%c0_8, %c0_9, %c0_10] : memref<1x1x128xf32, #tpu.memory_space<vmem>>, vector<1x1x128xf32>
    %12 = vector.shape_cast %11 : vector<1x1x128xf32> to vector<1x128xf32>
    %13 = vector.shape_cast %10 : vector<1x128xf32> to vector<1x1x128xf32>
    tpu.vector_store %arg4[%c0_8, %c0_9, %c0_10], %13 {strides = array<i32>} : memref<1x1x128xf32, #tpu.memory_space<vmem>>, vector<1x1x128xf32>,
    return
  }
  func.func @transform_0(%arg0: i32) -> (i32, i32) {
    %c0_i32 = arith.constant 0 : i32
    %c0_i32_0 = arith.constant 0 : i32
    return %arg0, %c0_i32 : i32, i32
  }
  func.func @transform_1(%arg0: i32) -> (i32, i32) {
    %c0_i32 = arith.constant 0 : i32
    %c0_i32_0 = arith.constant 0 : i32
    %c0_i32_1 = arith.constant 0 : i32
    return %c0_i32, %c0_i32_0 : i32, i32
  }
  func.func @transform_2(%arg0: i32) -> (i32, i32, i32) {
    %c0_i32 = arith.constant 0 : i32
    %c0_i32_0 = arith.constant 0 : i32
    %c0_i32_1 = arith.constant 0 : i32
    return %arg0, %c0_i32, %c0_i32_0 : i32, i32, i32
  }
  func.func @transform_3(%arg0: i32) -> (i32, i32, i32) {
    %c0_i32 = arith.constant 0 : i32
    %c0_i32_0 = arith.constant 0 : i32
    %c0_i32_1 = arith.constant 0 : i32
    return %arg0, %c0_i32, %c0_i32_0 : i32, i32, i32
  }
}

module attributes {stable_mosaic.version = 11 : i64} {
  func.func @_conv_apply_kernel(%arg0: i32, %arg1: memref<512x36xbf16, #tpu.memory_space<vmem>>, %arg2: memref<36x128xbf16, #tpu.memory_space<vmem>>, %arg3: memref<1x128xf32, #tpu.memory_space<vmem>>, %arg4: memref<1x128xf32, #tpu.memory_space<vmem>>, %arg5: memref<512x128xf32, #tpu.memory_space<vmem>>) attributes {dimension_semantics = [#tpu.dimension_semantics<parallel>], iteration_bounds = array<i64: 1>, scalar_prefetch = 0 : i64, scratch_operands = 0 : i64, tpu.core_type = #tpu.core_type<tc>, window_params = [{transform_indices = @transform_0, window_bounds = array<i64: 512, 36>}, {pipeline_mode = #tpu.pipeline_mode<synchronous>, transform_indices = @transform_1, window_bounds = array<i64: 36, 128>}, {pipeline_mode = #tpu.pipeline_mode<synchronous>, transform_indices = @transform_2, window_bounds = array<i64: 1, 128>}, {pipeline_mode = #tpu.pipeline_mode<synchronous>, transform_indices = @transform_3, window_bounds = array<i64: 1, 128>}, {transform_indices = @transform_4, window_bounds = array<i64: 512, 128>}]} {
    %c0 = arith.constant 0 : index
    %c0_0 = arith.constant 0 : index
    %0 = vector.load %arg1[%c0, %c0_0] : memref<512x36xbf16, #tpu.memory_space<vmem>>, vector<512x36xbf16>
    %c0_1 = arith.constant 0 : index
    %c0_2 = arith.constant 0 : index
    %1 = vector.load %arg2[%c0_1, %c0_2] : memref<36x128xbf16, #tpu.memory_space<vmem>>, vector<36x128xbf16>
    %cst = arith.constant dense<0.000000e+00> : vector<512x128xf32>
    %2 = tpu.matmul %0, %1, %cst {dimension_numbers = #tpu.dot_dimension_numbers<[1], [0], [0], [1], [0, 0, 1, 1], [], []>} : vector<512x36xbf16>, vector<36x128xbf16>, vector<512x128xf32> -> vector<512x128xf32>
    %c0_3 = arith.constant 0 : index
    %c0_4 = arith.constant 0 : index
    %3 = vector.load %arg3[%c0_3, %c0_4] : memref<1x128xf32, #tpu.memory_space<vmem>>, vector<1x128xf32>
    %4 = vector.broadcast %3 : vector<1x128xf32> to vector<512x128xf32>
    %5 = arith.mulf %2, %4 : vector<512x128xf32>
    %c0_5 = arith.constant 0 : index
    %c0_6 = arith.constant 0 : index
    %6 = vector.load %arg4[%c0_5, %c0_6] : memref<1x128xf32, #tpu.memory_space<vmem>>, vector<1x128xf32>
    %7 = vector.broadcast %6 : vector<1x128xf32> to vector<512x128xf32>
    %8 = arith.addf %5, %7 : vector<512x128xf32>
    %c0_7 = arith.constant 0 : index
    %c0_8 = arith.constant 0 : index
    %9 = vector.load %arg5[%c0_7, %c0_8] : memref<512x128xf32, #tpu.memory_space<vmem>>, vector<512x128xf32>
    tpu.vector_store %arg5[%c0_7, %c0_8], %8 {strides = array<i32>} : memref<512x128xf32, #tpu.memory_space<vmem>>, vector<512x128xf32>,
    return
  }
  func.func @transform_0(%arg0: i32) -> (i32, i32) {
    %c0_i32 = arith.constant 0 : i32
    %c0_i32_0 = arith.constant 0 : i32
    return %arg0, %c0_i32 : i32, i32
  }
  func.func @transform_1(%arg0: i32) -> (i32, i32) {
    %c0_i32 = arith.constant 0 : i32
    %c0_i32_0 = arith.constant 0 : i32
    %c0_i32_1 = arith.constant 0 : i32
    return %c0_i32, %c0_i32_0 : i32, i32
  }
  func.func @transform_2(%arg0: i32) -> (i32, i32) {
    %c0_i32 = arith.constant 0 : i32
    %c0_i32_0 = arith.constant 0 : i32
    %c0_i32_1 = arith.constant 0 : i32
    return %c0_i32, %c0_i32_0 : i32, i32
  }
  func.func @transform_3(%arg0: i32) -> (i32, i32) {
    %c0_i32 = arith.constant 0 : i32
    %c0_i32_0 = arith.constant 0 : i32
    %c0_i32_1 = arith.constant 0 : i32
    return %c0_i32, %c0_i32_0 : i32, i32
  }
  func.func @transform_4(%arg0: i32) -> (i32, i32) {
    %c0_i32 = arith.constant 0 : i32
    %c0_i32_0 = arith.constant 0 : i32
    return %arg0, %c0_i32 : i32, i32
  }
}

</mosaic_0001>

<bundles_post_ra>
// kernel: atrous_module_forward.2
= control target key start
LH: loop header
LB: loop body
LE: loop exit
PB: predicated region body
PF: predicated region fallthrough
CT: control target
= control target key end

     0   :  { %vm355_vm0 = vcmask 1041408   ;;  %vm258_vm1 = vcmask 293888   ;;  %s1318_s1 = inlined_call_operand.vmem [shape: bf16[36,128], index: 1, kind: input, shape index: {}]   ;;  %s1319_s0 = inlined_call_operand.vmem [shape: bf16[512,36], index: 0, kind: input, shape index: {}]   ;;  %s1320_s2 = inlined_call_operand.vmem [shape: f32[1,1,128], index: 2, kind: output, shape index: {0}]   ;;  %s1321_s3 = inlined_call_operand.vmem [shape: f32[1,1,128], index: 3, kind: output, shape index: {1}]  }
   0x1   :  { %v1040_v0 = vld [vmem:[%s1318_s1 + $0x10] ss:$0 sps:$4 sm:$0x33]   ;;  %v1041_v1 = vld [vmem:[%s1318_s1 + $0x8] sm:$0xff]   ;;  %v1043_v3 = vld [vmem:[%s1319_s0] sm:$0xff]  }
   0x2   :  { %1038 = vmatprep.subr.msk.bf16.mxu0 %vm355_vm0, %v1040_v0  ;;  %v357_v2 = vsel %vm355_vm0, %v1040_v0, 0  ;;  %1039 = vmatprep.subr.msk.bf16.mxu1 %vm355_vm0, %v1040_v0  ;;  %v1042_v4 = vld [vmem:[%s1318_s1] sm:$0xff]   ;;  %v1044_v5 = vld [vmem:[%s1319_s0 + $0x8] sm:$0xff]   ;;  %v1045_v6 = vld [vmem:[%s1319_s0 + $0x10] sm:$0xff]  }
   0x3   :  { %963 = vmatpush3.bf16.msra.mxu0 %v357_v2  ;;  %1035 = vmatpush3.bf16.msra.mxu1 %v357_v2  ;;  %v1046_v7 = vld [vmem:[%s1319_s0 + $0x18] sm:$0xff]   ;;  %v1047_v8 = vld [vmem:[%s1319_s0 + $0x20] sm:$0xff]   ;;  %v1060_v10 = vld [vmem:[%s1319_s0 + $0x88] sm:$0xff]  }
   0x4   :  { %964 = vmatprep.subr.bf16.mxu0 %v1041_v1  ;;  %1033 = vmatprep.subr.bf16.mxu1 %v1041_v1  ;;  %v1059_v9 = vld [vmem:[%s1319_s0 + $0x80] sm:$0xff]   ;;  %v1061_v11 = vld [vmem:[%s1319_s0 + $0x90] sm:$0xff]   ;;  %v1048_v12 = vld [vmem:[%s1319_s0 + $0x28] sm:$0xff]  }
   0x5   :  { %968 = vmatprep.mubr.msk.bf16.mxu0 %vm258_vm1, %v1043_v3  ;;  %1000 = vmatprep.mubr.msk.bf16.mxu1 %vm258_vm1, %v1059_v9  ;;  %v1049_v13 = vld [vmem:[%s1319_s0 + $0x30] sm:$0xff]   ;;  %v1062_v14 = vld [vmem:[%s1319_s0 + $0x98] sm:$0xff]   ;;  %v1063_v15 = vld [vmem:[%s1319_s0 + $0xa0] sm:$0xff]  }
   0x6   :  { %v1050_v16 = vld [vmem:[%s1319_s0 + $0x38] sm:$0xff]   ;;  %v1064_v17 = vld [vmem:[%s1319_s0 + $0xa8] sm:$0xff]   ;;  %v1051_v18 = vld [vmem:[%s1319_s0 + $0x40] sm:$0xff]  }
   0x7   :  { %965 = vmatpush3.bf16.msra.mxu0 %v1041_v1  ;;  %1036 = vmatpush3.bf16.msra.mxu1 %v1041_v1  ;;  %v1065_v19 = vld [vmem:[%s1319_s0 + $0xb0] sm:$0xff]   ;;  %v1052_v20 = vld [vmem:[%s1319_s0 + $0x48] sm:$0xff]   ;;  %v1066_v21 = vld [vmem:[%s1319_s0 + $0xb8] sm:$0xff]  }
   0x8   :  { %966 = vmatprep.subr.bf16.mxu0 %v1042_v4  ;;  %1034 = vmatprep.subr.bf16.mxu1 %v1042_v4  ;;  %v1053_v22 = vld [vmem:[%s1319_s0 + $0x50] sm:$0xff]   ;;  %v1067_v23 = vld [vmem:[%s1319_s0 + $0xc0] sm:$0xff]   ;;  %v1054_v24 = vld [vmem:[%s1319_s0 + $0x58] sm:$0xff]  }
   0x9   :  { %v1068_v25 = vld [vmem:[%s1319_s0 + $0xc8] sm:$0xff]   ;;  %v1055_v26 = vld [vmem:[%s1319_s0 + $0x60] sm:$0xff]   ;;  %v1069_v27 = vld [vmem:[%s1319_s0 + $0xd0] sm:$0xff]  }
   0xa   :  { %v1056_v28 = vld [vmem:[%s1319_s0 + $0x68] sm:$0xff]   ;;  %v1070_v29 = vld [vmem:[%s1319_s0 + $0xd8] sm:$0xff]   ;;  %v1057_v30 = vld [vmem:[%s1319_s0 + $0x70] sm:$0xff]  }
   0xb   :  { %967 = vmatpush3.bf16.msra.mxu0 %v1042_v4  ;;  %1037 = vmatpush3.bf16.msra.mxu1 %v1042_v4  ;;  %v1071_v31 = vld [vmem:[%s1319_s0 + $0xe0] sm:$0xff]   ;;  %v1058_v32 = vld [vmem:[%s1319_s0 + $0x78] sm:$0xff]   ;;  %v1072_v33 = vld [vmem:[%s1319_s0 + $0xe8] sm:$0xff]  }
   0xc   :  { %v1073_v34 = vld [vmem:[%s1319_s0 + $0xf0] sm:$0xff]   ;;  %v1074_v35 = vld [vmem:[%s1319_s0 + $0xf8] sm:$0xff]  }
   0xe   :  { %969 = vmatmul.mubr.msk.bf16.vlgmr.msra.gmra.mxu0 %vm258_vm1, %v1044_v5  ;;  %1001 = vmatmul.mubr.msk.bf16.vlgmr.msra.gmra.mxu1 %vm258_vm1, %v1060_v10 }
   0xf   :  { %972 = vmatprep.mubr.msk.bf16.mxu0 %vm258_vm1, %v1045_v6  ;;  %1004 = vmatprep.mubr.msk.bf16.mxu1 %vm258_vm1, %v1061_v11 }
  0x16   :  { %973 = vmatmul.mubr.msk.bf16.gmra.mxu0 %vm258_vm1, %v1046_v7  ;;  %1005 = vmatmul.mubr.msk.bf16.gmra.mxu1 %vm258_vm1, %v1062_v14 }
  0x17   :  { %976 = vmatprep.mubr.msk.bf16.mxu0 %vm258_vm1, %v1047_v8  ;;  %1008 = vmatprep.mubr.msk.bf16.mxu1 %vm258_vm1, %v1063_v15 }
  0x1e   :  { %977 = vmatmul.mubr.msk.bf16.gmra.mxu0 %vm258_vm1, %v1048_v12  ;;  %1009 = vmatmul.mubr.msk.bf16.gmra.mxu1 %vm258_vm1, %v1064_v17 }
  0x1f   :  { %980 = vmatprep.mubr.msk.bf16.mxu0 %vm258_vm1, %v1049_v13  ;;  %1012 = vmatprep.mubr.msk.bf16.mxu1 %vm258_vm1, %v1065_v19 }
  0x26   :  { %981 = vmatmul.mubr.msk.bf16.gmra.mxu0 %vm258_vm1, %v1050_v16  ;;  %1013 = vmatmul.mubr.msk.bf16.gmra.mxu1 %vm258_vm1, %v1066_v21 }
  0x27   :  { %984 = vmatprep.mubr.msk.bf16.mxu0 %vm258_vm1, %v1051_v18  ;;  %1016 = vmatprep.mubr.msk.bf16.mxu1 %vm258_vm1, %v1067_v23 }
  0x2e   :  { %985 = vmatmul.mubr.msk.bf16.gmra.mxu0 %vm258_vm1, %v1052_v20  ;;  %1017 = vmatmul.mubr.msk.bf16.gmra.mxu1 %vm258_vm1, %v1068_v25 }
  0x2f   :  { %988 = vmatprep.mubr.msk.bf16.mxu0 %vm258_vm1, %v1053_v22  ;;  %1020 = vmatprep.mubr.msk.bf16.mxu1 %vm258_vm1, %v1069_v27 }
  0x36   :  { %989 = vmatmul.mubr.msk.bf16.gmra.mxu0 %vm258_vm1, %v1054_v24  ;;  %1021 = vmatmul.mubr.msk.bf16.gmra.mxu1 %vm258_vm1, %v1070_v29 }
  0x37   :  { %992 = vmatprep.mubr.msk.bf16.mxu0 %vm258_vm1, %v1055_v26  ;;  %1024 = vmatprep.mubr.msk.bf16.mxu1 %vm258_vm1, %v1071_v31 }
  0x3e   :  { %993 = vmatmul.mubr.msk.bf16.gmra.mxu0 %vm258_vm1, %v1056_v28  ;;  %1025 = vmatmul.mubr.msk.bf16.gmra.mxu1 %vm258_vm1, %v1072_v33 }
  0x3f   :  { %996 = vmatprep.mubr.msk.bf16.mxu0 %vm258_vm1, %v1057_v30  ;;  %1028 = vmatprep.mubr.msk.bf16.mxu1 %vm258_vm1, %v1073_v34 }
  0x46   :  { %997 = vmatmul.mubr.msk.bf16.gmra.mxu0 %vm258_vm1, %v1058_v32  ;;  %1029 = vmatmul.mubr.msk.bf16.gmra.mxu1 %vm258_vm1, %v1074_v35 }
  0xce   :  { %v970_v36 = vpop.f32.mrf.mxu0  ;;  %v1232_v44 = vpop.f32.mrf.mxu1 }
  0xcf   :  { %v720_v45 = vmul.f32 %v970_v36, %v970_v36 }
  0xd0   :  { %v393_v37 = vpop.f32.mrf.mxu0  ;;  %v1234_v49 = vpop.f32.mrf.mxu1 }
  0xd1   :  { %v718_v40 = vmul.f32 %v393_v37, %v393_v37 }
  0xd2   :  { %v971_v38 = vpop.f32.mrf.mxu0  ;;  %v1236_v54 = vpop.f32.mrf.mxu1 }
  0xd3   :  { %v721_v50 = vmul.f32 %v971_v38, %v971_v38 }
  0xd4   :  { %v396_v39 = vpop.f32.mrf.mxu0  ;;  %v1238_v59 = vpop.f32.mrf.mxu1 }
  0xd5   :  { %v648_v41 = vadd.f32 %v396_v39, %v393_v37  ;;  %v719_v42 = vmul.f32 %v396_v39, %v396_v39 }
  0xd6   :  { %v974_v43 = vpop.f32.mrf.mxu0  ;;  %v1240_v0 = vpop.f32.mrf.mxu1 }
  0xd7   :  { %v649_v46 = vadd.f32 %v970_v36, %v648_v41  ;;  %v782_v47 = vadd.f32 %v719_v42, %v718_v40  ;;  %v724_v1 = vmul.f32 %v974_v43, %v974_v43 }
  0xd8   :  { %v409_v48 = vpop.f32.mrf.mxu0  ;;  %v1242_v9 = vpop.f32.mrf.mxu1 }
  0xd9   :  { %v783_v51 = vadd.f32 %v782_v47, %v720_v45  ;;  %v650_v52 = vadd.f32 %v971_v38, %v649_v46  ;;  %v722_v56 = vmul.f32 %v409_v48, %v409_v48 }
  0xda   :  { %v975_v53 = vpop.f32.mrf.mxu0  ;;  %v1244_v18 = vpop.f32.mrf.mxu1 }
  0xdb   :  { %v651_v55 = vadd.f32 %v650_v52, %v409_v48  ;;  %v784_v57 = vadd.f32 %v783_v51, %v721_v50  ;;  %v725_v5 = vmul.f32 %v975_v53, %v975_v53 }
  0xdc   :  { %v412_v58 = vpop.f32.mrf.mxu0  ;;  %v1246_v27 = vpop.f32.mrf.mxu1 }
  0xdd   :  { %v785_v60 = vadd.f32 %v784_v57, %v722_v56  ;;  %v652_v61 = vadd.f32 %v651_v55, %v412_v58  ;;  %v723_v62 = vmul.f32 %v412_v58, %v412_v58 }
  0xde   :  { %v978_v63 = vpop.f32.mrf.mxu0  ;;  %v1248_v36 = vpop.f32.mrf.mxu1 }
  0xdf   :  { %v653_v2 = vadd.f32 %v974_v43, %v652_v61  ;;  %v786_v3 = vadd.f32 %v785_v60, %v723_v62  ;;  %v728_v19 = vmul.f32 %v978_v63, %v978_v63 }
  0xe0   :  { %v425_v4 = vpop.f32.mrf.mxu0  ;;  %v1250_v46 = vpop.f32.mrf.mxu1 }
  0xe1   :  { %v787_v6 = vadd.f32 %v786_v3, %v724_v1  ;;  %v654_v7 = vadd.f32 %v975_v53, %v653_v2  ;;  %v726_v11 = vmul.f32 %v425_v4, %v425_v4 }
  0xe2   :  { %v979_v8 = vpop.f32.mrf.mxu0  ;;  %v1252_v57 = vpop.f32.mrf.mxu1 }
  0xe3   :  { %v655_v10 = vadd.f32 %v654_v7, %v425_v4  ;;  %v788_v12 = vadd.f32 %v787_v6, %v725_v5  ;;  %v729_v23 = vmul.f32 %v979_v8, %v979_v8 }
  0xe4   :  { %v428_v13 = vpop.f32.mrf.mxu0  ;;  %v1254_v4 = vpop.f32.mrf.mxu1 }
  0xe5   :  { %v789_v14 = vadd.f32 %v788_v12, %v726_v11  ;;  %v656_v15 = vadd.f32 %v655_v10, %v428_v13  ;;  %v727_v16 = vmul.f32 %v428_v13, %v428_v13 }
  0xe6   :  { %v982_v17 = vpop.f32.mrf.mxu0 }
  0xe7   :  { %v657_v20 = vadd.f32 %v978_v63, %v656_v15  ;;  %v790_v21 = vadd.f32 %v789_v14, %v727_v16  ;;  %v732_v37 = vmul.f32 %v982_v17, %v982_v17  ;;  %v1256_v14 = vpop.f32.mrf.mxu1 }
  0xe8   :  { %v441_v22 = vpop.f32.mrf.mxu0 }
  0xe9   :  { %v791_v24 = vadd.f32 %v790_v21, %v728_v19  ;;  %v658_v25 = vadd.f32 %v979_v8, %v657_v20  ;;  %v730_v29 = vmul.f32 %v441_v22, %v441_v22 }
  0xea   :  { %v983_v26 = vpop.f32.mrf.mxu0 }
  0xeb   :  { %v659_v28 = vadd.f32 %v658_v25, %v441_v22  ;;  %v792_v30 = vadd.f32 %v791_v24, %v729_v23  ;;  %v733_v41 = vmul.f32 %v983_v26, %v983_v26  ;;  %v1258_v24 = vpop.f32.mrf.mxu1 }
  0xec   :  { %v444_v31 = vpop.f32.mrf.mxu0 }
  0xed   :  { %v793_v32 = vadd.f32 %v792_v30, %v730_v29  ;;  %v660_v33 = vadd.f32 %v659_v28, %v444_v31  ;;  %v731_v34 = vmul.f32 %v444_v31, %v444_v31 }
  0xee   :  { %v986_v35 = vpop.f32.mrf.mxu0 }
  0xef   :  { %v661_v38 = vadd.f32 %v982_v17, %v660_v33  ;;  %v794_v39 = vadd.f32 %v793_v32, %v731_v34  ;;  %v736_v58 = vmul.f32 %v986_v35, %v986_v35  ;;  %v1260_v34 = vpop.f32.mrf.mxu1 }
  0xf0   :  { %v457_v40 = vpop.f32.mrf.mxu0 }
  0xf1   :  { %v795_v42 = vadd.f32 %v794_v39, %v732_v37  ;;  %v662_v43 = vadd.f32 %v983_v26, %v661_v38  ;;  %v734_v48 = vmul.f32 %v457_v40, %v457_v40 }
  0xf2   :  { %v987_v45 = vpop.f32.mrf.mxu0 }
  0xf3   :  { %v663_v47 = vadd.f32 %v662_v43, %v457_v40  ;;  %v796_v50 = vadd.f32 %v795_v42, %v733_v41  ;;  %v737_v63 = vmul.f32 %v987_v45, %v987_v45 }
  0xf4   :  { %v460_v51 = vpop.f32.mrf.mxu0 }
  0xf5   :  { %v797_v52 = vadd.f32 %v796_v50, %v734_v48  ;;  %v664_v53 = vadd.f32 %v663_v47, %v460_v51  ;;  %v735_v55 = vmul.f32 %v460_v51, %v460_v51 }
  0xf6   :  { %v990_v56 = vpop.f32.mrf.mxu0 }
  0xf7   :  { %v665_v60 = vadd.f32 %v986_v35, %v664_v53  ;;  %v798_v61 = vadd.f32 %v797_v52, %v735_v55  ;;  %v740_v15 = vmul.f32 %v990_v56, %v990_v56 }
  0xf8   :  { %v473_v62 = vpop.f32.mrf.mxu0 }
  0xf9   :  { %v799_v1 = vadd.f32 %v798_v61, %v736_v58  ;;  %v666_v2 = vadd.f32 %v987_v45, %v665_v60  ;;  %v738_v6 = vmul.f32 %v473_v62, %v473_v62  ;;  %v572_v45 = vpop.f32.mrf.mxu1 }
  0xfa   :  { %v991_v3 = vpop.f32.mrf.mxu0 }
  0xfb   :  { %v667_v5 = vadd.f32 %v666_v2, %v473_v62  ;;  %v800_v7 = vadd.f32 %v799_v1, %v737_v63  ;;  %v741_v20 = vmul.f32 %v991_v3, %v991_v3 }
  0xfc   :  { %v476_v8 = vpop.f32.mrf.mxu0 }
  0xfd   :  { %v801_v10 = vadd.f32 %v800_v7, %v738_v6  ;;  %v668_v11 = vadd.f32 %v667_v5, %v476_v8  ;;  %v739_v12 = vmul.f32 %v476_v8, %v476_v8  ;;  %v751_v8 = vmul.f32 %v1238_v59, %v1238_v59 }
  0xfe   :  { %v994_v13 = vpop.f32.mrf.mxu0 }
  0xff   :  { %v669_v16 = vadd.f32 %v990_v56, %v668_v11  ;;  %v802_v17 = vadd.f32 %v801_v10, %v739_v12  ;;  %v744_v35 = vmul.f32 %v994_v13, %v994_v13  ;;  %v1262_v56 = vpop.f32.mrf.mxu1  ;;  %v752_v12 = vmul.f32 %v1232_v44, %v1232_v44 }
 0x100   :  { %v489_v19 = vpop.f32.mrf.mxu0 }
 0x101   :  { %v803_v21 = vadd.f32 %v802_v17, %v740_v15  ;;  %v670_v22 = vadd.f32 %v991_v3, %v669_v16  ;;  %v742_v26 = vmul.f32 %v489_v19, %v489_v19  ;;  %v585_v2 = vpop.f32.mrf.mxu1  ;;  %v750_v3 = vmul.f32 %v1234_v49, %v1234_v49 }
 0x102   :  { %v995_v23 = vpop.f32.mrf.mxu0  ;;  %v753_v16 = vmul.f32 %v1236_v54, %v1236_v54 }
 0x103   :  { %v671_v25 = vadd.f32 %v670_v22, %v489_v19  ;;  %v804_v28 = vadd.f32 %v803_v21, %v741_v20  ;;  %v745_v40 = vmul.f32 %v995_v23, %v995_v23  ;;  %v1019_v11 = vpop.f32.mrf.mxu1 }
 0x104   :  { %v492_v29 = vpop.f32.mrf.mxu0 }
 0x105   :  { %v805_v30 = vadd.f32 %v804_v28, %v742_v26  ;;  %v672_v31 = vadd.f32 %v671_v25, %v492_v29  ;;  %v743_v32 = vmul.f32 %v492_v29, %v492_v29  ;;  %v756_v26 = vmul.f32 %v1240_v0, %v1240_v0 }
 0x106   :  { %v998_v33 = vpop.f32.mrf.mxu0  ;;  %v757_v29 = vmul.f32 %v1244_v18, %v1244_v18 }
 0x107   :  { %v673_v37 = vadd.f32 %v994_v13, %v672_v31  ;;  %v806_v38 = vadd.f32 %v805_v30, %v743_v32  ;;  %v748_v58 = vmul.f32 %v998_v33, %v998_v33 }
 0x108   :  { %v505_v39 = vpop.f32.mrf.mxu0 }
 0x109   :  { %v807_v41 = vadd.f32 %v806_v38, %v744_v35  ;;  %v674_v42 = vadd.f32 %v995_v23, %v673_v37  ;;  %v746_v48 = vmul.f32 %v505_v39, %v505_v39 }
 0x10a   :  { %v999_v43 = vpop.f32.mrf.mxu0 }
 0x10b   :  { %v675_v47 = vadd.f32 %v674_v42, %v505_v39  ;;  %v808_v50 = vadd.f32 %v807_v41, %v745_v40  ;;  %v749_v62 = vmul.f32 %v999_v43, %v999_v43  ;;  %v760_v39 = vmul.f32 %v1248_v36, %v1248_v36 }
 0x10c   :  { %v508_v51 = vpop.f32.mrf.mxu0  ;;  %v761_v41 = vmul.f32 %v1252_v57, %v1252_v57 }
 0x10d   :  { %v809_v52 = vadd.f32 %v808_v50, %v746_v48  ;;  %v676_v53 = vadd.f32 %v675_v47, %v508_v51  ;;  %v747_v55 = vmul.f32 %v508_v51, %v508_v51  ;;  %v762_v48 = vmul.f32 %v1258_v24, %v1258_v24 }
 0x10f   :  { %v677_v60 = vadd.f32 %v998_v33, %v676_v53  ;;  %v810_v61 = vadd.f32 %v809_v52, %v747_v55  ;;  %v758_v33 = vmul.f32 %v1250_v46, %v1250_v46  ;;  %v763_v52 = vmul.f32 %v572_v45, %v572_v45 }
 0x111   :  { %v678_v63 = vadd.f32 %v999_v43, %v677_v60  ;;  %v811_v1 = vadd.f32 %v810_v61, %v748_v58 }
 0x113   :  { %v812_v5 = vadd.f32 %v811_v1, %v749_v62  ;;  %v679_v6 = vadd.f32 %v678_v63, %v1234_v49  ;;  %v588_v49 = vpop.f32.mrf.mxu1 }
 0x115   :  { %v680_v7 = vadd.f32 %v679_v6, %v1238_v59  ;;  %v813_v10 = vadd.f32 %v812_v5, %v750_v3  ;;  %v754_v59 = vmul.f32 %v1242_v9, %v1242_v9  ;;  %v1022_v25 = vpop.f32.mrf.mxu1 }
 0x117   :  { %v681_v13 = vadd.f32 %v1232_v44, %v680_v7  ;;  %v814_v15 = vadd.f32 %v813_v10, %v751_v8  ;;  %v755_v44 = vmul.f32 %v1246_v27, %v1246_v27  ;;  %v601_v31 = vpop.f32.mrf.mxu1  ;;  %v768_v7 = vmul.f32 %v1262_v56, %v1262_v56 }
 0x118   :  { %v769_v10 = vmul.f32 %v1019_v11, %v1019_v11 }
 0x119   :  { %v815_v17 = vadd.f32 %v814_v15, %v752_v12  ;;  %v682_v19 = vadd.f32 %v1236_v54, %v681_v13  ;;  %v1023_v38 = vpop.f32.mrf.mxu1 }
 0x11b   :  { %v683_v20 = vadd.f32 %v682_v19, %v1242_v9  ;;  %v816_v21 = vadd.f32 %v815_v17, %v753_v16  ;;  %v604_v43 = vpop.f32.mrf.mxu1 }
 0x11d   :  { %v817_v22 = vadd.f32 %v816_v21, %v754_v59  ;;  %v684_v23 = vadd.f32 %v683_v20, %v1246_v27  ;;  %v1026_v53 = vpop.f32.mrf.mxu1  ;;  %v771_v20 = vmul.f32 %v604_v43, %v604_v43  ;;  %v772_v21 = vmul.f32 %v1022_v25, %v1022_v25 }
 0x11f   :  { %v685_v28 = vadd.f32 %v1240_v0, %v684_v23  ;;  %v818_v54 = vadd.f32 %v817_v22, %v755_v44  ;;  %v759_v0 = vmul.f32 %v1254_v4, %v1254_v4  ;;  %v617_v62 = vpop.f32.mrf.mxu1  ;;  %v773_v23 = vmul.f32 %v1023_v38, %v1023_v38 }
 0x121   :  { %v819_v30 = vadd.f32 %v818_v54, %v756_v26  ;;  %v686_v9 = vadd.f32 %v1244_v18, %v685_v28  ;;  %v1027_v6 = vpop.f32.mrf.mxu1  ;;  %v774_v54 = vmul.f32 %v617_v62, %v617_v62 }
 0x123   :  { %v687_v32 = vadd.f32 %v686_v9, %v1250_v46  ;;  %v820_v27 = vadd.f32 %v819_v30, %v757_v29  ;;  %v620_v15 = vpop.f32.mrf.mxu1 }
 0x124   :  { %v775_v9 = vmul.f32 %v620_v15, %v620_v15 }
 0x125   :  { %v821_v35 = vadd.f32 %v820_v27, %v758_v33  ;;  %v688_v37 = vadd.f32 %v687_v32, %v1254_v4  ;;  %v1030_v59 = vpop.f32.mrf.mxu1 }
 0x127   :  { %v689_v40 = vadd.f32 %v1248_v36, %v688_v37  ;;  %v822_v18 = vadd.f32 %v821_v35, %v759_v0  ;;  %v764_v36 = vmul.f32 %v1256_v14, %v1256_v14  ;;  %v633_v28 = vpop.f32.mrf.mxu1  ;;  %v777_v35 = vmul.f32 %v1027_v6, %v1027_v6 }
 0x129   :  { %v823_v42 = vadd.f32 %v822_v18, %v760_v39  ;;  %v690_v46 = vadd.f32 %v1252_v57, %v689_v40  ;;  %v765_v57 = vmul.f32 %v1260_v34, %v1260_v34  ;;  %v1031_v32 = vpop.f32.mrf.mxu1  ;;  %v778_v40 = vmul.f32 %v633_v28, %v633_v28 }
 0x12b   :  { %v691_v47 = vadd.f32 %v690_v46, %v1258_v24  ;;  %v824_v4 = vadd.f32 %v823_v42, %v761_v41  ;;  %v766_v24 = vmul.f32 %v585_v2, %v585_v2  ;;  %v636_v39 = vpop.f32.mrf.mxu1  ;;  %v780_v46 = vmul.f32 %v1030_v59, %v1030_v59 }
 0x12c   :  { %v779_v42 = vmul.f32 %v636_v39, %v636_v39 }
 0x12d   :  { %v825_v50 = vadd.f32 %v824_v4, %v762_v48  ;;  %v692_v51 = vadd.f32 %v691_v47, %v572_v45  ;;  %v767_v45 = vmul.f32 %v588_v49, %v588_v49  ;;  %v781_v48 = vmul.f32 %v1031_v32, %v1031_v32 }
 0x12f   :  { %v693_v55 = vadd.f32 %v1256_v14, %v692_v51  ;;  %v826_v58 = vadd.f32 %v825_v50, %v763_v52 }
 0x131   :  { %v827_v60 = vadd.f32 %v826_v58, %v764_v36  ;;  %v694_v61 = vadd.f32 %v1260_v34, %v693_v55  ;;  %v770_v34 = vmul.f32 %v601_v31, %v601_v31 }
 0x133   :  { %v695_v63 = vadd.f32 %v694_v61, %v585_v2  ;;  %v828_v1 = vadd.f32 %v827_v60, %v765_v57 }
 0x135   :  { %v829_v3 = vadd.f32 %v828_v1, %v766_v24  ;;  %v696_v5 = vadd.f32 %v695_v63, %v588_v49 }
 0x137   :  { %v697_v14 = vadd.f32 %v1262_v56, %v696_v5  ;;  %v830_v8 = vadd.f32 %v829_v3, %v767_v45 }
 0x139   :  { %v831_v12 = vadd.f32 %v830_v8, %v768_v7  ;;  %v698_v13 = vadd.f32 %v1019_v11, %v697_v14 }
 0x13b   :  { %v699_v16 = vadd.f32 %v698_v13, %v601_v31  ;;  %v832_v17 = vadd.f32 %v831_v12, %v769_v10  ;;  %v776_v31 = vmul.f32 %v1026_v53, %v1026_v53 }
 0x13d   :  { %v833_v19 = vadd.f32 %v832_v17, %v770_v34  ;;  %v700_v2 = vadd.f32 %v699_v16, %v604_v43 }
 0x13f   :  { %v701_v49 = vadd.f32 %v1022_v25, %v700_v2  ;;  %v834_v22 = vadd.f32 %v833_v19, %v771_v20 }
 0x141   :  { %v835_v44 = vadd.f32 %v834_v22, %v772_v21  ;;  %v702_v26 = vadd.f32 %v1023_v38, %v701_v49 }
 0x143   :  { %v703_v56 = vadd.f32 %v702_v26, %v617_v62  ;;  %v836_v29 = vadd.f32 %v835_v44, %v773_v23 }
 0x145   :  { %v837_v30 = vadd.f32 %v836_v29, %v774_v54  ;;  %v704_v11 = vadd.f32 %v703_v56, %v620_v15 }
 0x147   :  { %v705_v33 = vadd.f32 %v1026_v53, %v704_v11  ;;  %v838_v27 = vadd.f32 %v837_v30, %v775_v9 }
 0x149   :  { %v839_v37 = vadd.f32 %v838_v27, %v776_v31  ;;  %v706_v0 = vadd.f32 %v1027_v6, %v705_v33 }
 0x14b   :  { %v707_v25 = vadd.f32 %v706_v0, %v633_v28  ;;  %v840_v18 = vadd.f32 %v839_v37, %v777_v35 }
 0x14d   :  { %v841_v41 = vadd.f32 %v840_v18, %v778_v40  ;;  %v708_v38 = vadd.f32 %v707_v25, %v636_v39 }
 0x14f   :  { %v709_v43 = vadd.f32 %v1030_v59, %v708_v38  ;;  %v842_v47 = vadd.f32 %v841_v41, %v779_v42 }
 0x151   :  { %v710_v4 = vadd.f32 %v1031_v32, %v709_v43  ;;  %v843_v50 = vadd.f32 %v842_v47, %v780_v46 }
 0x153   :  { %v711_v51 = vrot.slane %v710_v4, 4  ;;  %v844_v52 = vadd.f32 %v843_v50, %v781_v48 }
 0x155   :  { %v712_v53 = vadd.f32 %v711_v51, %v710_v4  ;;  %v845_v36 = vrot.slane %v844_v52, 4 }
 0x157   :  { %v713_v55 = vrot.slane %v712_v53, 2  ;;  %v846_v58 = vadd.f32 %v845_v36, %v844_v52 }
 0x159   :  { %v714_v57 = vadd.f32 %v713_v55, %v712_v53  ;;  %v847_v60 = vrot.slane %v846_v58, 2 }
 0x15b   :  { %v715_v61 = vrot.slane %v714_v57, 1  ;;  %v848_v62 = vadd.f32 %v847_v60, %v846_v58 }
 0x15d   :  { %v716_v63 = vadd.f32 %v715_v61, %v714_v57  ;;  %v849_v24 = vrot.slane %v848_v62, 1 }
 0x15f   :  { %717 = vst [vmem:[%s1320_s2] sm:$0x1] %v716_v63  ;;  %v850_v1 = vadd.f32 %v849_v24, %v848_v62 }
 0x161   :  { %851 = vst [vmem:[%s1321_s3] sm:$0x1] %v850_v1 }

// kernel: atrous_module_forward.3
= control target key start
LH: loop header
LB: loop body
LE: loop exit
PB: predicated region body
PF: predicated region fallthrough
CT: control target
= control target key end

     0   :  { %vm359_vm0 = vcmask 1041408   ;;  %vm262_vm1 = vcmask 293888   ;;  %s1571_s1 = inlined_call_operand.vmem [shape: bf16[36,128], index: 1, kind: input, shape index: {}]   ;;  %s1572_s0 = inlined_call_operand.vmem [shape: bf16[512,36], index: 0, kind: input, shape index: {}]   ;;  %s1573_s2 = inlined_call_operand.vmem [shape: f32[1,128], index: 2, kind: input, shape index: {}]   ;;  %s1574_s3 = inlined_call_operand.vmem [shape: f32[1,128], index: 3, kind: input, shape index: {}]   ;;  %s1575_s4 = inlined_call_operand.vmem [shape: f32[512,128], index: 4, kind: output, shape index: {}]  }
   0x1   :  { %v1044_v0 = vld [vmem:[%s1571_s1 + $0x10] ss:$0 sps:$4 sm:$0x33]   ;;  %v1045_v1 = vld [vmem:[%s1571_s1 + $0x8] sm:$0xff]   ;;  %v1046_v3 = vld [vmem:[%s1571_s1] sm:$0xff]  }
   0x2   :  { %1042 = vmatprep.subr.msk.bf16.mxu0 %vm359_vm0, %v1044_v0  ;;  %1043 = vmatprep.subr.msk.bf16.mxu1 %vm359_vm0, %v1044_v0  ;;  %v361_v2 = vsel %vm359_vm0, %v1044_v0, 0  ;;  %v1047_v4 = vld [vmem:[%s1572_s0] sm:$0xff]   ;;  %v1049_v6 = vld [vmem:[%s1572_s0 + $0x8] sm:$0xff]   ;;  %v1051_v8 = vld [vmem:[%s1572_s0 + $0x10] sm:$0xff]  }
   0x3   :  { %967 = vmatpush3.bf16.msra.mxu0 %v361_v2  ;;  %1039 = vmatpush3.bf16.msra.mxu1 %v361_v2  ;;  %v1048_v5 = vld [vmem:[%s1572_s0 + $0x80] sm:$0xff]   ;;  %v1050_v7 = vld [vmem:[%s1572_s0 + $0x88] sm:$0xff]   ;;  %v1052_v9 = vld [vmem:[%s1572_s0 + $0x90] sm:$0xff]  }
   0x4   :  { %968 = vmatprep.subr.bf16.mxu0 %v1045_v1  ;;  %1037 = vmatprep.subr.bf16.mxu1 %v1045_v1  ;;  %v1053_v10 = vld [vmem:[%s1572_s0 + $0x18] sm:$0xff]   ;;  %v1055_v12 = vld [vmem:[%s1572_s0 + $0x20] sm:$0xff]   ;;  %v1057_v14 = vld [vmem:[%s1572_s0 + $0x28] sm:$0xff]  }
   0x5   :  { %972 = vmatprep.mubr.msk.bf16.mxu0 %vm262_vm1, %v1047_v4  ;;  %1004 = vmatprep.mubr.msk.bf16.mxu1 %vm262_vm1, %v1048_v5  ;;  %v1054_v11 = vld [vmem:[%s1572_s0 + $0x98] sm:$0xff]   ;;  %v1056_v13 = vld [vmem:[%s1572_s0 + $0xa0] sm:$0xff]   ;;  %v1058_v15 = vld [vmem:[%s1572_s0 + $0xa8] sm:$0xff]  }
   0x6   :  { %v1059_v16 = vld [vmem:[%s1572_s0 + $0x30] sm:$0xff]   ;;  %v1061_v18 = vld [vmem:[%s1572_s0 + $0x38] sm:$0xff]   ;;  %v1063_v20 = vld [vmem:[%s1572_s0 + $0x40] sm:$0xff]  }
   0x7   :  { %969 = vmatpush3.bf16.msra.mxu0 %v1045_v1  ;;  %1040 = vmatpush3.bf16.msra.mxu1 %v1045_v1  ;;  %v1060_v17 = vld [vmem:[%s1572_s0 + $0xb0] sm:$0xff]   ;;  %v1062_v19 = vld [vmem:[%s1572_s0 + $0xb8] sm:$0xff]   ;;  %v1064_v21 = vld [vmem:[%s1572_s0 + $0xc0] sm:$0xff]  }
   0x8   :  { %970 = vmatprep.subr.bf16.mxu0 %v1046_v3  ;;  %1038 = vmatprep.subr.bf16.mxu1 %v1046_v3  ;;  %v1065_v22 = vld [vmem:[%s1572_s0 + $0x48] sm:$0xff]   ;;  %v1067_v24 = vld [vmem:[%s1572_s0 + $0x50] sm:$0xff]   ;;  %v1069_v26 = vld [vmem:[%s1572_s0 + $0x58] sm:$0xff]  }
   0x9   :  { %v1066_v23 = vld [vmem:[%s1572_s0 + $0xc8] sm:$0xff]   ;;  %v1068_v25 = vld [vmem:[%s1572_s0 + $0xd0] sm:$0xff]   ;;  %v1070_v27 = vld [vmem:[%s1572_s0 + $0xd8] sm:$0xff]  }
   0xa   :  { %v1071_v28 = vld [vmem:[%s1572_s0 + $0x60] sm:$0xff]   ;;  %v1073_v30 = vld [vmem:[%s1572_s0 + $0x68] sm:$0xff]   ;;  %v1075_v32 = vld [vmem:[%s1572_s0 + $0x70] sm:$0xff]  }
   0xb   :  { %971 = vmatpush3.bf16.msra.mxu0 %v1046_v3  ;;  %1041 = vmatpush3.bf16.msra.mxu1 %v1046_v3  ;;  %v1072_v29 = vld [vmem:[%s1572_s0 + $0xe0] sm:$0xff]   ;;  %v1074_v31 = vld [vmem:[%s1572_s0 + $0xe8] sm:$0xff]   ;;  %v1076_v33 = vld [vmem:[%s1572_s0 + $0xf0] sm:$0xff]  }
   0xc   :  { %v1077_v34 = vld [vmem:[%s1572_s0 + $0x78] sm:$0xff]   ;;  %v1244_v36 = vld [vmem:[%s1573_s2] ss:$0 sm:$0xff] }
   0xd   :  { %v1078_v35 = vld [vmem:[%s1572_s0 + $0xf8] sm:$0xff]   ;;  %v1249_v38 = vld [vmem:[%s1574_s3] ss:$0 sm:$0xff] }
   0xe   :  { %973 = vmatmul.mubr.msk.bf16.vlgmr.msra.gmra.mxu0 %vm262_vm1, %v1049_v6  ;;  %1005 = vmatmul.mubr.msk.bf16.vlgmr.msra.gmra.mxu1 %vm262_vm1, %v1050_v7 }
   0xf   :  { %976 = vmatprep.mubr.msk.bf16.mxu0 %vm262_vm1, %v1051_v8  ;;  %1008 = vmatprep.mubr.msk.bf16.mxu1 %vm262_vm1, %v1052_v9 }
  0x16   :  { %977 = vmatmul.mubr.msk.bf16.gmra.mxu0 %vm262_vm1, %v1053_v10  ;;  %1009 = vmatmul.mubr.msk.bf16.gmra.mxu1 %vm262_vm1, %v1054_v11 }
  0x17   :  { %980 = vmatprep.mubr.msk.bf16.mxu0 %vm262_vm1, %v1055_v12  ;;  %1012 = vmatprep.mubr.msk.bf16.mxu1 %vm262_vm1, %v1056_v13 }
  0x1e   :  { %981 = vmatmul.mubr.msk.bf16.gmra.mxu0 %vm262_vm1, %v1057_v14  ;;  %1013 = vmatmul.mubr.msk.bf16.gmra.mxu1 %vm262_vm1, %v1058_v15 }
  0x1f   :  { %984 = vmatprep.mubr.msk.bf16.mxu0 %vm262_vm1, %v1059_v16  ;;  %1016 = vmatprep.mubr.msk.bf16.mxu1 %vm262_vm1, %v1060_v17 }
  0x26   :  { %985 = vmatmul.mubr.msk.bf16.gmra.mxu0 %vm262_vm1, %v1061_v18  ;;  %1017 = vmatmul.mubr.msk.bf16.gmra.mxu1 %vm262_vm1, %v1062_v19 }
  0x27   :  { %988 = vmatprep.mubr.msk.bf16.mxu0 %vm262_vm1, %v1063_v20  ;;  %1020 = vmatprep.mubr.msk.bf16.mxu1 %vm262_vm1, %v1064_v21 }
  0x2e   :  { %989 = vmatmul.mubr.msk.bf16.gmra.mxu0 %vm262_vm1, %v1065_v22  ;;  %1021 = vmatmul.mubr.msk.bf16.gmra.mxu1 %vm262_vm1, %v1066_v23 }
  0x2f   :  { %992 = vmatprep.mubr.msk.bf16.mxu0 %vm262_vm1, %v1067_v24  ;;  %1024 = vmatprep.mubr.msk.bf16.mxu1 %vm262_vm1, %v1068_v25 }
  0x36   :  { %993 = vmatmul.mubr.msk.bf16.gmra.mxu0 %vm262_vm1, %v1069_v26  ;;  %1025 = vmatmul.mubr.msk.bf16.gmra.mxu1 %vm262_vm1, %v1070_v27 }
  0x37   :  { %996 = vmatprep.mubr.msk.bf16.mxu0 %vm262_vm1, %v1071_v28  ;;  %1028 = vmatprep.mubr.msk.bf16.mxu1 %vm262_vm1, %v1072_v29 }
  0x3e   :  { %997 = vmatmul.mubr.msk.bf16.gmra.mxu0 %vm262_vm1, %v1073_v30  ;;  %1029 = vmatmul.mubr.msk.bf16.gmra.mxu1 %vm262_vm1, %v1074_v31 }
  0x3f   :  { %1000 = vmatprep.mubr.msk.bf16.mxu0 %vm262_vm1, %v1075_v32  ;;  %1032 = vmatprep.mubr.msk.bf16.mxu1 %vm262_vm1, %v1076_v33 }
  0x46   :  { %1001 = vmatmul.mubr.msk.bf16.gmra.mxu0 %vm262_vm1, %v1077_v34  ;;  %1033 = vmatmul.mubr.msk.bf16.gmra.mxu1 %vm262_vm1, %v1078_v35 }
  0xce   :  { %v974_v37 = vpop.f32.mrf.mxu0  ;;  %v1006_v39 = vpop.f32.mrf.mxu1 }
  0xcf   :  { %v661_v40 = vmul.f32 %v974_v37, %v1244_v36  ;;  %v693_v41 = vmul.f32 %v1006_v39, %v1244_v36 }
  0xd0   :  { %v397_v42 = vpop.f32.mrf.mxu0  ;;  %v525_v43 = vpop.f32.mrf.mxu1 }
  0xd1   :  { %v732_v44 = vadd.f32 %v1249_v38, %v661_v40  ;;  %v764_v45 = vadd.f32 %v1249_v38, %v693_v41  ;;  %v659_v46 = vmul.f32 %v1244_v36, %v397_v42  ;;  %v691_v47 = vmul.f32 %v1244_v36, %v525_v43 }
  0xd2   :  { %v975_v48 = vpop.f32.mrf.mxu0  ;;  %v1007_v49 = vpop.f32.mrf.mxu1 }
  0xd3   :  { %796 = vst [vmem:[%s1575_s4 + $0x10] sm:$0xff] %v732_v44  ;;  %828 = vst [vmem:[%s1575_s4 + $0x110] sm:$0xff] %v764_v45  ;;  %v730_v50 = vadd.f32 %v1249_v38, %v659_v46  ;;  %v762_v51 = vadd.f32 %v1249_v38, %v691_v47  ;;  %v662_v52 = vmul.f32 %v975_v48, %v1244_v36 }
  0xd4   :  { %v694_v53 = vmul.f32 %v1007_v49, %v1244_v36  ;;  %v400_v54 = vpop.f32.mrf.mxu0  ;;  %v528_v55 = vpop.f32.mrf.mxu1 }
  0xd5   :  { %794 = vst [vmem:[%s1575_s4] sm:$0xff] %v730_v50  ;;  %826 = vst [vmem:[%s1575_s4 + $0x100] sm:$0xff] %v762_v51  ;;  %v733_v56 = vadd.f32 %v1249_v38, %v662_v52  ;;  %v660_v58 = vmul.f32 %v1244_v36, %v400_v54  ;;  %v692_v59 = vmul.f32 %v1244_v36, %v528_v55 }
  0xd6   :  { %v765_v57 = vadd.f32 %v1249_v38, %v694_v53  ;;  %v978_v60 = vpop.f32.mrf.mxu0  ;;  %v1010_v61 = vpop.f32.mrf.mxu1 }
  0xd7   :  { %797 = vst [vmem:[%s1575_s4 + $0x18] sm:$0xff] %v733_v56  ;;  %v731_v62 = vadd.f32 %v1249_v38, %v660_v58  ;;  %v763_v63 = vadd.f32 %v1249_v38, %v692_v59  ;;  %v665_v0 = vmul.f32 %v978_v60, %v1244_v36  ;;  %v697_v1 = vmul.f32 %v1010_v61, %v1244_v36 }
  0xd8   :  { %829 = vst [vmem:[%s1575_s4 + $0x118] sm:$0xff] %v765_v57  ;;  %v413_v2 = vpop.f32.mrf.mxu0  ;;  %v541_v3 = vpop.f32.mrf.mxu1 }
  0xd9   :  { %795 = vst [vmem:[%s1575_s4 + $0x8] sm:$0xff] %v731_v62  ;;  %827 = vst [vmem:[%s1575_s4 + $0x108] sm:$0xff] %v763_v63  ;;  %v736_v4 = vadd.f32 %v1249_v38, %v665_v0  ;;  %v768_v5 = vadd.f32 %v1249_v38, %v697_v1  ;;  %v663_v6 = vmul.f32 %v1244_v36, %v413_v2 }
  0xda   :  { %v695_v7 = vmul.f32 %v1244_v36, %v541_v3  ;;  %v979_v8 = vpop.f32.mrf.mxu0  ;;  %v1011_v9 = vpop.f32.mrf.mxu1 }
  0xdb   :  { %800 = vst [vmem:[%s1575_s4 + $0x30] sm:$0xff] %v736_v4  ;;  %832 = vst [vmem:[%s1575_s4 + $0x130] sm:$0xff] %v768_v5  ;;  %v734_v10 = vadd.f32 %v1249_v38, %v663_v6  ;;  %v666_v12 = vmul.f32 %v979_v8, %v1244_v36  ;;  %v698_v13 = vmul.f32 %v1011_v9, %v1244_v36 }
  0xdc   :  { %v766_v11 = vadd.f32 %v1249_v38, %v695_v7  ;;  %v416_v14 = vpop.f32.mrf.mxu0  ;;  %v544_v15 = vpop.f32.mrf.mxu1 }
  0xdd   :  { %798 = vst [vmem:[%s1575_s4 + $0x20] sm:$0xff] %v734_v10  ;;  %v737_v16 = vadd.f32 %v1249_v38, %v666_v12  ;;  %v769_v17 = vadd.f32 %v1249_v38, %v698_v13  ;;  %v664_v18 = vmul.f32 %v1244_v36, %v416_v14  ;;  %v696_v19 = vmul.f32 %v1244_v36, %v544_v15 }
  0xde   :  { %830 = vst [vmem:[%s1575_s4 + $0x120] sm:$0xff] %v766_v11  ;;  %v982_v20 = vpop.f32.mrf.mxu0  ;;  %v1014_v21 = vpop.f32.mrf.mxu1 }
  0xdf   :  { %801 = vst [vmem:[%s1575_s4 + $0x38] sm:$0xff] %v737_v16  ;;  %833 = vst [vmem:[%s1575_s4 + $0x138] sm:$0xff] %v769_v17  ;;  %v735_v22 = vadd.f32 %v1249_v38, %v664_v18  ;;  %v767_v23 = vadd.f32 %v1249_v38, %v696_v19  ;;  %v669_v24 = vmul.f32 %v982_v20, %v1244_v36 }
  0xe0   :  { %v701_v25 = vmul.f32 %v1014_v21, %v1244_v36  ;;  %v429_v26 = vpop.f32.mrf.mxu0  ;;  %v557_v27 = vpop.f32.mrf.mxu1 }
  0xe1   :  { %799 = vst [vmem:[%s1575_s4 + $0x28] sm:$0xff] %v735_v22  ;;  %831 = vst [vmem:[%s1575_s4 + $0x128] sm:$0xff] %v767_v23  ;;  %v740_v28 = vadd.f32 %v1249_v38, %v669_v24  ;;  %v667_v30 = vmul.f32 %v1244_v36, %v429_v26  ;;  %v699_v31 = vmul.f32 %v1244_v36, %v557_v27 }
  0xe2   :  { %v772_v29 = vadd.f32 %v1249_v38, %v701_v25  ;;  %v983_v32 = vpop.f32.mrf.mxu0  ;;  %v1015_v33 = vpop.f32.mrf.mxu1 }
  0xe3   :  { %804 = vst [vmem:[%s1575_s4 + $0x50] sm:$0xff] %v740_v28  ;;  %v738_v34 = vadd.f32 %v1249_v38, %v667_v30  ;;  %v770_v35 = vadd.f32 %v1249_v38, %v699_v31  ;;  %v670_v37 = vmul.f32 %v983_v32, %v1244_v36  ;;  %v702_v39 = vmul.f32 %v1015_v33, %v1244_v36 }
  0xe4   :  { %836 = vst [vmem:[%s1575_s4 + $0x150] sm:$0xff] %v772_v29  ;;  %v432_v40 = vpop.f32.mrf.mxu0  ;;  %v560_v41 = vpop.f32.mrf.mxu1 }
  0xe5   :  { %802 = vst [vmem:[%s1575_s4 + $0x40] sm:$0xff] %v738_v34  ;;  %834 = vst [vmem:[%s1575_s4 + $0x140] sm:$0xff] %v770_v35  ;;  %v741_v42 = vadd.f32 %v1249_v38, %v670_v37  ;;  %v773_v43 = vadd.f32 %v1249_v38, %v702_v39  ;;  %v668_v44 = vmul.f32 %v1244_v36, %v432_v40 }
  0xe6   :  { %v700_v45 = vmul.f32 %v1244_v36, %v560_v41  ;;  %v986_v46 = vpop.f32.mrf.mxu0  ;;  %v1018_v47 = vpop.f32.mrf.mxu1 }
  0xe7   :  { %805 = vst [vmem:[%s1575_s4 + $0x58] sm:$0xff] %v741_v42  ;;  %837 = vst [vmem:[%s1575_s4 + $0x158] sm:$0xff] %v773_v43  ;;  %v739_v48 = vadd.f32 %v1249_v38, %v668_v44  ;;  %v673_v50 = vmul.f32 %v986_v46, %v1244_v36  ;;  %v705_v51 = vmul.f32 %v1018_v47, %v1244_v36 }
  0xe8   :  { %v771_v49 = vadd.f32 %v1249_v38, %v700_v45  ;;  %v445_v52 = vpop.f32.mrf.mxu0  ;;  %v573_v53 = vpop.f32.mrf.mxu1 }
  0xe9   :  { %803 = vst [vmem:[%s1575_s4 + $0x48] sm:$0xff] %v739_v48  ;;  %v744_v54 = vadd.f32 %v1249_v38, %v673_v50  ;;  %v776_v55 = vadd.f32 %v1249_v38, %v705_v51  ;;  %v671_v56 = vmul.f32 %v1244_v36, %v445_v52  ;;  %v703_v57 = vmul.f32 %v1244_v36, %v573_v53 }
  0xea   :  { %835 = vst [vmem:[%s1575_s4 + $0x148] sm:$0xff] %v771_v49  ;;  %v987_v58 = vpop.f32.mrf.mxu0  ;;  %v1019_v59 = vpop.f32.mrf.mxu1 }
  0xeb   :  { %808 = vst [vmem:[%s1575_s4 + $0x70] sm:$0xff] %v744_v54  ;;  %840 = vst [vmem:[%s1575_s4 + $0x170] sm:$0xff] %v776_v55  ;;  %v742_v60 = vadd.f32 %v1249_v38, %v671_v56  ;;  %v774_v61 = vadd.f32 %v1249_v38, %v703_v57  ;;  %v674_v62 = vmul.f32 %v987_v58, %v1244_v36 }
  0xec   :  { %v706_v63 = vmul.f32 %v1019_v59, %v1244_v36  ;;  %v448_v0 = vpop.f32.mrf.mxu0  ;;  %v576_v1 = vpop.f32.mrf.mxu1 }
  0xed   :  { %806 = vst [vmem:[%s1575_s4 + $0x60] sm:$0xff] %v742_v60  ;;  %838 = vst [vmem:[%s1575_s4 + $0x160] sm:$0xff] %v774_v61  ;;  %v745_v2 = vadd.f32 %v1249_v38, %v674_v62  ;;  %v672_v4 = vmul.f32 %v1244_v36, %v448_v0  ;;  %v704_v5 = vmul.f32 %v1244_v36, %v576_v1 }
  0xee   :  { %v777_v3 = vadd.f32 %v1249_v38, %v706_v63  ;;  %v990_v6 = vpop.f32.mrf.mxu0  ;;  %v1022_v7 = vpop.f32.mrf.mxu1 }
  0xef   :  { %809 = vst [vmem:[%s1575_s4 + $0x78] sm:$0xff] %v745_v2  ;;  %v743_v8 = vadd.f32 %v1249_v38, %v672_v4  ;;  %v775_v9 = vadd.f32 %v1249_v38, %v704_v5  ;;  %v677_v10 = vmul.f32 %v990_v6, %v1244_v36  ;;  %v709_v11 = vmul.f32 %v1022_v7, %v1244_v36 }
  0xf0   :  { %841 = vst [vmem:[%s1575_s4 + $0x178] sm:$0xff] %v777_v3  ;;  %v461_v12 = vpop.f32.mrf.mxu0  ;;  %v589_v13 = vpop.f32.mrf.mxu1 }
  0xf1   :  { %807 = vst [vmem:[%s1575_s4 + $0x68] sm:$0xff] %v743_v8  ;;  %839 = vst [vmem:[%s1575_s4 + $0x168] sm:$0xff] %v775_v9  ;;  %v748_v14 = vadd.f32 %v1249_v38, %v677_v10  ;;  %v780_v15 = vadd.f32 %v1249_v38, %v709_v11  ;;  %v675_v16 = vmul.f32 %v1244_v36, %v461_v12 }
  0xf2   :  { %v707_v17 = vmul.f32 %v1244_v36, %v589_v13  ;;  %v991_v18 = vpop.f32.mrf.mxu0  ;;  %v1023_v19 = vpop.f32.mrf.mxu1 }
  0xf3   :  { %812 = vst [vmem:[%s1575_s4 + $0x90] sm:$0xff] %v748_v14  ;;  %844 = vst [vmem:[%s1575_s4 + $0x190] sm:$0xff] %v780_v15  ;;  %v746_v20 = vadd.f32 %v1249_v38, %v675_v16  ;;  %v678_v22 = vmul.f32 %v991_v18, %v1244_v36  ;;  %v710_v23 = vmul.f32 %v1023_v19, %v1244_v36 }
  0xf4   :  { %v778_v21 = vadd.f32 %v1249_v38, %v707_v17  ;;  %v464_v24 = vpop.f32.mrf.mxu0  ;;  %v592_v25 = vpop.f32.mrf.mxu1 }
  0xf5   :  { %810 = vst [vmem:[%s1575_s4 + $0x80] sm:$0xff] %v746_v20  ;;  %v749_v26 = vadd.f32 %v1249_v38, %v678_v22  ;;  %v781_v27 = vadd.f32 %v1249_v38, %v710_v23  ;;  %v676_v28 = vmul.f32 %v1244_v36, %v464_v24  ;;  %v708_v29 = vmul.f32 %v1244_v36, %v592_v25 }
  0xf6   :  { %842 = vst [vmem:[%s1575_s4 + $0x180] sm:$0xff] %v778_v21  ;;  %v994_v30 = vpop.f32.mrf.mxu0  ;;  %v1026_v31 = vpop.f32.mrf.mxu1 }
  0xf7   :  { %813 = vst [vmem:[%s1575_s4 + $0x98] sm:$0xff] %v749_v26  ;;  %845 = vst [vmem:[%s1575_s4 + $0x198] sm:$0xff] %v781_v27  ;;  %v747_v32 = vadd.f32 %v1249_v38, %v676_v28  ;;  %v779_v33 = vadd.f32 %v1249_v38, %v708_v29  ;;  %v681_v34 = vmul.f32 %v994_v30, %v1244_v36 }
  0xf8   :  { %v713_v35 = vmul.f32 %v1026_v31, %v1244_v36  ;;  %v477_v37 = vpop.f32.mrf.mxu0  ;;  %v605_v39 = vpop.f32.mrf.mxu1 }
  0xf9   :  { %811 = vst [vmem:[%s1575_s4 + $0x88] sm:$0xff] %v747_v32  ;;  %843 = vst [vmem:[%s1575_s4 + $0x188] sm:$0xff] %v779_v33  ;;  %v752_v40 = vadd.f32 %v1249_v38, %v681_v34  ;;  %v679_v42 = vmul.f32 %v1244_v36, %v477_v37  ;;  %v711_v43 = vmul.f32 %v1244_v36, %v605_v39 }
  0xfa   :  { %v784_v41 = vadd.f32 %v1249_v38, %v713_v35  ;;  %v995_v44 = vpop.f32.mrf.mxu0  ;;  %v1027_v45 = vpop.f32.mrf.mxu1 }
  0xfb   :  { %816 = vst [vmem:[%s1575_s4 + $0xb0] sm:$0xff] %v752_v40  ;;  %v750_v46 = vadd.f32 %v1249_v38, %v679_v42  ;;  %v782_v47 = vadd.f32 %v1249_v38, %v711_v43  ;;  %v682_v48 = vmul.f32 %v995_v44, %v1244_v36  ;;  %v714_v49 = vmul.f32 %v1027_v45, %v1244_v36 }
  0xfc   :  { %848 = vst [vmem:[%s1575_s4 + $0x1b0] sm:$0xff] %v784_v41  ;;  %v480_v50 = vpop.f32.mrf.mxu0  ;;  %v608_v51 = vpop.f32.mrf.mxu1 }
  0xfd   :  { %814 = vst [vmem:[%s1575_s4 + $0xa0] sm:$0xff] %v750_v46  ;;  %846 = vst [vmem:[%s1575_s4 + $0x1a0] sm:$0xff] %v782_v47  ;;  %v753_v52 = vadd.f32 %v1249_v38, %v682_v48  ;;  %v785_v53 = vadd.f32 %v1249_v38, %v714_v49  ;;  %v680_v54 = vmul.f32 %v1244_v36, %v480_v50 }
  0xfe   :  { %v712_v55 = vmul.f32 %v1244_v36, %v608_v51  ;;  %v998_v56 = vpop.f32.mrf.mxu0  ;;  %v1030_v57 = vpop.f32.mrf.mxu1 }
  0xff   :  { %817 = vst [vmem:[%s1575_s4 + $0xb8] sm:$0xff] %v753_v52  ;;  %849 = vst [vmem:[%s1575_s4 + $0x1b8] sm:$0xff] %v785_v53  ;;  %v751_v58 = vadd.f32 %v1249_v38, %v680_v54  ;;  %v685_v60 = vmul.f32 %v998_v56, %v1244_v36  ;;  %v717_v61 = vmul.f32 %v1030_v57, %v1244_v36 }
 0x100   :  { %v783_v59 = vadd.f32 %v1249_v38, %v712_v55  ;;  %v493_v62 = vpop.f32.mrf.mxu0  ;;  %v621_v63 = vpop.f32.mrf.mxu1 }
 0x101   :  { %815 = vst [vmem:[%s1575_s4 + $0xa8] sm:$0xff] %v751_v58  ;;  %v756_v0 = vadd.f32 %v1249_v38, %v685_v60  ;;  %v788_v1 = vadd.f32 %v1249_v38, %v717_v61  ;;  %v683_v2 = vmul.f32 %v1244_v36, %v493_v62  ;;  %v715_v3 = vmul.f32 %v1244_v36, %v621_v63 }
 0x102   :  { %847 = vst [vmem:[%s1575_s4 + $0x1a8] sm:$0xff] %v783_v59  ;;  %v999_v4 = vpop.f32.mrf.mxu0  ;;  %v1031_v5 = vpop.f32.mrf.mxu1 }
 0x103   :  { %820 = vst [vmem:[%s1575_s4 + $0xd0] sm:$0xff] %v756_v0  ;;  %852 = vst [vmem:[%s1575_s4 + $0x1d0] sm:$0xff] %v788_v1  ;;  %v754_v6 = vadd.f32 %v1249_v38, %v683_v2  ;;  %v786_v7 = vadd.f32 %v1249_v38, %v715_v3  ;;  %v686_v8 = vmul.f32 %v999_v4, %v1244_v36 }
 0x104   :  { %v718_v9 = vmul.f32 %v1031_v5, %v1244_v36  ;;  %v496_v10 = vpop.f32.mrf.mxu0  ;;  %v624_v11 = vpop.f32.mrf.mxu1 }
 0x105   :  { %818 = vst [vmem:[%s1575_s4 + $0xc0] sm:$0xff] %v754_v6  ;;  %850 = vst [vmem:[%s1575_s4 + $0x1c0] sm:$0xff] %v786_v7  ;;  %v757_v12 = vadd.f32 %v1249_v38, %v686_v8  ;;  %v684_v14 = vmul.f32 %v1244_v36, %v496_v10  ;;  %v716_v15 = vmul.f32 %v1244_v36, %v624_v11 }
 0x106   :  { %v789_v13 = vadd.f32 %v1249_v38, %v718_v9  ;;  %v1002_v16 = vpop.f32.mrf.mxu0  ;;  %v1034_v17 = vpop.f32.mrf.mxu1 }
 0x107   :  { %821 = vst [vmem:[%s1575_s4 + $0xd8] sm:$0xff] %v757_v12  ;;  %v755_v18 = vadd.f32 %v1249_v38, %v684_v14  ;;  %v787_v19 = vadd.f32 %v1249_v38, %v716_v15  ;;  %v689_v20 = vmul.f32 %v1002_v16, %v1244_v36  ;;  %v721_v21 = vmul.f32 %v1034_v17, %v1244_v36 }
 0x108   :  { %853 = vst [vmem:[%s1575_s4 + $0x1d8] sm:$0xff] %v789_v13  ;;  %v509_v22 = vpop.f32.mrf.mxu0  ;;  %v637_v23 = vpop.f32.mrf.mxu1 }
 0x109   :  { %819 = vst [vmem:[%s1575_s4 + $0xc8] sm:$0xff] %v755_v18  ;;  %851 = vst [vmem:[%s1575_s4 + $0x1c8] sm:$0xff] %v787_v19  ;;  %v760_v24 = vadd.f32 %v1249_v38, %v689_v20  ;;  %v792_v25 = vadd.f32 %v1249_v38, %v721_v21  ;;  %v687_v26 = vmul.f32 %v1244_v36, %v509_v22 }
 0x10a   :  { %v719_v27 = vmul.f32 %v1244_v36, %v637_v23  ;;  %v1003_v28 = vpop.f32.mrf.mxu0  ;;  %v1035_v29 = vpop.f32.mrf.mxu1 }
 0x10b   :  { %824 = vst [vmem:[%s1575_s4 + $0xf0] sm:$0xff] %v760_v24  ;;  %856 = vst [vmem:[%s1575_s4 + $0x1f0] sm:$0xff] %v792_v25  ;;  %v758_v30 = vadd.f32 %v1249_v38, %v687_v26  ;;  %v690_v32 = vmul.f32 %v1003_v28, %v1244_v36  ;;  %v722_v33 = vmul.f32 %v1035_v29, %v1244_v36 }
 0x10c   :  { %v790_v31 = vadd.f32 %v1249_v38, %v719_v27  ;;  %v512_v34 = vpop.f32.mrf.mxu0  ;;  %v640_v35 = vpop.f32.mrf.mxu1 }
 0x10d   :  { %822 = vst [vmem:[%s1575_s4 + $0xe0] sm:$0xff] %v758_v30  ;;  %v761_v37 = vadd.f32 %v1249_v38, %v690_v32  ;;  %v793_v39 = vadd.f32 %v1249_v38, %v722_v33  ;;  %v688_v40 = vmul.f32 %v1244_v36, %v512_v34  ;;  %v720_v41 = vmul.f32 %v1244_v36, %v640_v35 }
 0x10e   :  { %854 = vst [vmem:[%s1575_s4 + $0x1e0] sm:$0xff] %v790_v31 }
 0x10f   :  { %825 = vst [vmem:[%s1575_s4 + $0xf8] sm:$0xff] %v761_v37  ;;  %857 = vst [vmem:[%s1575_s4 + $0x1f8] sm:$0xff] %v793_v39  ;;  %v759_v42 = vadd.f32 %v1249_v38, %v688_v40  ;;  %v791_v43 = vadd.f32 %v1249_v38, %v720_v41 }
 0x111   :  { %823 = vst [vmem:[%s1575_s4 + $0xe8] sm:$0xff] %v759_v42  ;;  %855 = vst [vmem:[%s1575_s4 + $0x1e8] sm:$0xff] %v791_v43 }

</bundles_post_ra>
